<compile_context>
chip_gen: v5e
topology: v5e:2x2
jax: 0.10.0
libtpu: 0.0.40
codegen_flags: <defaults>
</compile_context>

<pallas_src>
import math

import jax
import jax.numpy as jnp
from jax.experimental import pallas as pl
from jax.experimental.pallas import tpu as pltpu


# ----------------------------------------------------------------------------
# Kernel
# ----------------------------------------------------------------------------
def _make_adapter_kernel(eps: float, matmul_dtype):
    def adapter_kernel(x_ref, scale_ref, gamma_ref, beta_ref,
                       wd_ref, bd_ref, wu_ref, bu_ref, o_ref):
        # ---- LayerNorm in f32 (adapter_layernorm_option='in').
        # The f32 copy of x dies right after this block; the residual is
        # re-read from the VMEM input tile at the very end.
        x = x_ref[...].astype(jnp.float32)                      # (TILE_N, D)
        mean = jnp.mean(x, axis=-1, keepdims=True)
        cent = x - mean
        var = jnp.mean(cent * cent, axis=-1, keepdims=True)     # biased var (PyTorch)
        xn = cent * jax.lax.rsqrt(var + eps)
        xn = xn * gamma_ref[...] + beta_ref[...]                 # f32 (TILE_N, D)

        # ---- down_proj + ReLU (MXU operands in matmul_dtype, f32 accumulation)
        down = jnp.dot(xn.astype(matmul_dtype), wd_ref[...],
                       preferred_element_type=jnp.float32)
        down = jnp.maximum(down + bd_ref[...], 0.0)              # (TILE_N, Bpad)
        # dropout p=0.0 -> identity (eval semantics)

        # ---- up_proj, scale, residual add (residual is the pre-LN input)
        up = jnp.dot(down.astype(matmul_dtype), wu_ref[...],
                     preferred_element_type=jnp.float32)
        up = (up + bu_ref[...]) * scale_ref[0, 0]                # (TILE_N, D)
        o_ref[...] = (up + x_ref[...].astype(jnp.float32)).astype(o_ref.dtype)

    return adapter_kernel


# ----------------------------------------------------------------------------
# Generation-aware tiling / VMEM configuration
# ----------------------------------------------------------------------------
def _tpu_generation() -> str:
    try:
        kind = jax.devices()[0].device_kind.lower()
    except Exception:
        return "unknown"
    if "v7" in kind or "7x" in kind or "tpu7" in kind:
        return "v7"
    if "v6" in kind or "tpu6" in kind:
        return "v6"
    if "v5" in kind or "tpu5" in kind:
        return "v5"
    return "unknown"


def _vmem_config():
    """Returns dict(act_budget, vmem_limit, min_steps)."""
    gen = _tpu_generation()
    if gen == "v6":     # 128 MiB physical VMEM: go big
        return dict(act_budget=48 << 20, vmem_limit=100 << 20, min_steps=2)
    if gen == "v5":     # 128 MiB physical (16 MiB default scoped): raise limits
        return dict(act_budget=32 << 20, vmem_limit=80 << 20, min_steps=2)
    # v7x (64 MiB physical, 2 TensorCores) or unknown: conservative budget,
    # but require >= 4 grid steps so both cores get work and DMA overlaps.
    return dict(act_budget=24 << 20, vmem_limit=48 << 20, min_steps=4)


def _pick_tile_n(n_rows: int, d: int, bpad: int, io_itemsize: int,
                 budget_bytes: int, row_align: int, min_steps: int) -> int:
    # Per-row footprint:
    #   * 2x double-buffered input tile + 2x double-buffered output tile:
    #       4 * D * io_itemsize
    #   * live f32 intermediates in the body (xn, up, residual re-read, plus
    #     the (TILE_N, Bpad) down activation), with spill headroom:
    #       (4 * D + 2 * Bpad) * 4
    per_row = 4 * d * io_itemsize + (4 * d + 2 * bpad) * 4
    tile = max(budget_bytes // max(per_row, 1), row_align)
    tile = min(tile, 1024)
    if n_rows >= 2 * min_steps * row_align:
        # Never a single-block launch on large inputs: keep >= min_steps grid
        # steps so the BlockSpec pipeline overlaps DMA with compute and the
        # "parallel" axis can shard across v7x's 2 TensorCores.
        tile = min(tile, pl.cdiv(n_rows, min_steps))
    elif tile >= n_rows:
        return n_rows                       # small input: single block is fine
    return max(row_align, (tile // row_align) * row_align)


# ----------------------------------------------------------------------------
# BlockSpec helpers / call builder
# ----------------------------------------------------------------------------
def _const_spec(shape, single_buffer: bool):
    """Weight/bias spec: constant block index (0,0) -> resident across steps."""
    index_map = lambda i: (0, 0)
    if single_buffer:
        try:
            # Constant-index operands are never re-DMA'd; one buffer suffices.
            return pl.BlockSpec(shape, index_map, pipeline_mode=pl.Buffered(1))
        except (TypeError, AttributeError):
            pass
    return pl.BlockSpec(shape, index_map)


def _run_pallas(kernel, args, *, N, D, bpad, tile_n, out_dtype,
                vmem_limit, cost, alias_input, single_buffer_weights):
    grid = (pl.cdiv(N, tile_n),)
    cspec = lambda s: _const_spec(s, single_buffer_weights)
    return pl.pallas_call(
        kernel,
        out_shape=jax.ShapeDtypeStruct((N, D), out_dtype),
        grid_spec=pl.GridSpec(
            grid=grid,
            in_specs=[
                pl.BlockSpec((tile_n, D), lambda i: (i, 0)),           # x tile
                pl.BlockSpec(memory_space=pltpu.MemorySpace.SMEM),     # scale
                cspec((1, D)),                                         # gamma
                cspec((1, D)),                                         # beta
                cspec((D, bpad)),                                      # W_down
                cspec((1, bpad)),                                      # b_down
                cspec((bpad, D)),                                      # W_up
                cspec((1, D)),                                         # b_up
            ],
            out_specs=pl.BlockSpec((tile_n, D), lambda i: (i, 0)),
        ),
        compiler_params=pltpu.CompilerParams(
            dimension_semantics=("parallel",),
            vmem_limit_bytes=int(vmem_limit),
        ),
        cost_estimate=cost,
        input_output_aliases={0: 0} if alias_input else {},
    )(*args)


# ----------------------------------------------------------------------------
# Wrapper
# ----------------------------------------------------------------------------
def adapter_forward(x, params, *, scale=1.0, eps=1e-5,
                    matmul_dtype=jnp.bfloat16, tile_n=None,
                    donate_input=False):
    """x: (..., D). params: dict of adapter parameters (f32).

    matmul_dtype=bf16 is the recommended (memory-bound) path on all TPU
    generations; f32 MXU operands are for numerics testing only.
    """
    orig_shape = x.shape
    D = orig_shape[-1]
    N = int(math.prod(orig_shape[:-1]))
    x2 = x.reshape(N, D)

    gamma = params["ln_gamma"].reshape(1, D).astype(jnp.float32)
    beta = params["ln_beta"].reshape(1, D).astype(jnp.float32)
    wd = params["w_down"]                                    # (D, bneck)
    wu = params["w_up"]                                      # (bneck, D)
    bneck = wd.shape[1]

    # Pad the bottleneck to a lane-dense 128 (zeros are inert through ReLU and
    # the zero rows of W_up).  Do NOT pad to 256: the kernel is HBM-bound.
    bpad = max(128, ((bneck + 127) // 128) * 128)
    if bpad != bneck:
        wd = jnp.pad(wd, ((0, 0), (0, bpad - bneck)))
        wu = jnp.pad(wu, ((0, bpad - bneck), (0, 0)))
        bd = jnp.pad(params["b_down"], (0, bpad - bneck))
    else:
        bd = params["b_down"]
    bd = bd.reshape(1, bpad).astype(jnp.float32)
    bu = params["b_up"].reshape(1, D).astype(jnp.float32)
    wd = wd.astype(matmul_dtype)                             # MXU operand dtype
    wu = wu.astype(matmul_dtype)

    io_itemsize = jnp.dtype(x.dtype).itemsize
    mm_itemsize = jnp.dtype(matmul_dtype).itemsize
    row_align = 16 if io_itemsize < 4 else 8                 # bf16 tile is (16,128)

    cfg = _vmem_config()
    # Resident weight/bias footprint (assume worst-case double buffering when
    # budgeting, even though we request single-buffered weight specs).
    resident = 2 * (2 * D * bpad * mm_itemsize + (3 * D + bpad) * 4)
    act_budget = max(cfg["act_budget"] - resident, 2 << 20)

    if tile_n is None:
        tile_n = _pick_tile_n(N, D, bpad, io_itemsize, act_budget,
                              row_align, cfg["min_steps"])
    tile_n = min(int(tile_n), N)
    if tile_n < N:
        tile_n = max(row_align, (tile_n // row_align) * row_align)

    scale_arr = jnp.asarray(scale, jnp.float32).reshape(1, 1)

    cost = pl.CostEstimate(
        flops=int(4 * N * D * bpad + 10 * N * D),
        transcendentals=int(N),
        bytes_accessed=int(2 * N * D * io_itemsize
                           + 2 * D * bpad * mm_itemsize
                           + (3 * D + bpad) * 4),
    )

    kernel = _make_adapter_kernel(float(eps), matmul_dtype)
    run = lambda sb: _run_pallas(
        kernel, (x2, scale_arr, gamma, beta, wd, bd, wu, bu),
        N=N, D=D, bpad=bpad, tile_n=tile_n, out_dtype=x.dtype,
        vmem_limit=cfg["vmem_limit"], cost=cost,
        alias_input=donate_input, single_buffer_weights=sb)

    try:
        out = run(True)
    except Exception:
        # Fallback: default double-buffered weight specs (pure-VMEM-footprint
        # difference, identical semantics).
        out = run(False)

    return out.reshape(orig_shape)


# ----------------------------------------------------------------------------
# Parameter init mirroring Adapter.__init__ (init_option='lora')
# ----------------------------------------------------------------------------
def init_adapter_params(key, d_model, bottleneck=64):
    # kaiming_uniform_(down_proj.weight, a=sqrt(5)) on a (out, in) weight
    # => bound = 1/sqrt(fan_in) = 1/sqrt(d_model)
    bound = 1.0 / math.sqrt(d_model)
    w_down_t = jax.random.uniform(key, (bottleneck, d_model),
                                  minval=-bound, maxval=bound,
                                  dtype=jnp.float32)              # PyTorch (out, in)
    return {
        "ln_gamma": jnp.ones((d_model,), jnp.float32),
        "ln_beta": jnp.zeros((d_model,), jnp.float32),
        "w_down": w_down_t.T,                                     # (in, out)
        "b_down": jnp.zeros((bottleneck,), jnp.float32),
        "w_up": jnp.zeros((bottleneck, d_model), jnp.float32),    # zeros (lora)
        "b_up": jnp.zeros((d_model,), jnp.float32),
    }


# ----------------------------------------------------------------------------
# Pure-JAX reference of the PyTorch forward (eval mode)
# ----------------------------------------------------------------------------
def adapter_reference(x, params, *, scale=1.0, eps=1e-5):
    residual = x
    mean = jnp.mean(x, axis=-1, keepdims=True)
    var = jnp.mean((x - mean) ** 2, axis=-1, keepdims=True)
    xn = (x - mean) * jax.lax.rsqrt(var + eps)
    xn = xn * params["ln_gamma"] + params["ln_beta"]
    down = jnp.maximum(
        jnp.dot(xn, params["w_down"], precision=jax.lax.Precision.HIGHEST)
        + params["b_down"], 0.0)
    up = (jnp.dot(down, params["w_up"], precision=jax.lax.Precision.HIGHEST)
          + params["b_up"]) * scale
    return up + residual


# ----------------------------------------------------------------------------
# Self-test
# ----------------------------------------------------------------------------
if __name__ == "__main__":
    key = jax.random.PRNGKey(0)
    ks = jax.random.split(key, 8)

    # ---- Case 1: module-faithful init ('lora': zero up_proj), small shapes.
    B, S, D, BOTTLENECK = 2, 8, 32, 64
    x = jax.random.normal(ks[0], (B, S, D), dtype=jnp.float32)
    params = init_adapter_params(ks[1], D, BOTTLENECK)

    out = jax.block_until_ready(
        adapter_forward(x, params, scale=1.0, matmul_dtype=jnp.float32))
    ref = adapter_reference(x, params, scale=1.0)
    assert out.shape == (B, S, D)
    assert jnp.allclose(out, ref, atol=1e-4, rtol=1e-4), "case1 mismatch"

    # ---- Case 2: random ("trained") weights, multi-tile grid (N=384, tile 128).
    B2, S2, D2 = 2, 192, 128
    x_big = jax.random.normal(ks[2], (B2, S2, D2), dtype=jnp.float32)
    p2 = {
        "ln_gamma": 1.0 + 0.1 * jax.random.normal(ks[3], (D2,), jnp.float32),
        "ln_beta": 0.1 * jax.random.normal(ks[4], (D2,), jnp.float32),
        "w_down": jax.random.normal(ks[5], (D2, BOTTLENECK), jnp.float32)
                  / math.sqrt(D2),
        "b_down": 0.1 * jax.random.normal(ks[6], (BOTTLENECK,), jnp.float32),
        "w_up": jax.random.normal(ks[7], (BOTTLENECK, D2), jnp.float32)
                / math.sqrt(BOTTLENECK),
        "b_up": jnp.zeros((D2,), jnp.float32),
    }
    ref2 = adapter_reference(x_big, p2, scale=0.5)

    # f32 MXU path (tight numerics check only; bf16 is the production path)
    out_f32 = jax.block_until_ready(
        adapter_forward(x_big, p2, scale=0.5,
                        matmul_dtype=jnp.float32, tile_n=128))
    assert jnp.allclose(out_f32, ref2, atol=1e-3, rtol=1e-3), "case2 f32 mismatch"

    # bf16 MXU operands, f32 accumulation (recommended path; loose check)
    out_bf16mm = jax.block_until_ready(
        adapter_forward(x_big, p2, scale=0.5,
                        matmul_dtype=jnp.bfloat16, tile_n=128))
    assert jnp.allclose(out_bf16mm, ref2, atol=5e-2, rtol=5e-2), \
        "case2 bf16-matmul mismatch"

    # bf16 activation I/O (memory-bound win when the host model runs in bf16);
    # let the auto tile picker choose tile_n here (exercises the new budgeting).
    out_bf16io = jax.block_until_ready(
        adapter_forward(x_big.astype(jnp.bfloat16), p2, scale=0.5,
                        matmul_dtype=jnp.bfloat16))
    assert out_bf16io.dtype == jnp.bfloat16
    assert jnp.allclose(out_bf16io.astype(jnp.float32), ref2,
                        atol=1e-1, rtol=1e-1), "case2 bf16-io mismatch"

    print("KERNEL_OK")
</pallas_src>

<mosaic_0001>
module attributes {stable_mosaic.version = 11 : i64} {
  func.func @adapter_kernel(%arg0: i32, %arg1: memref<16x32xf32, #tpu.memory_space<vmem>>, %arg2: memref<1x1xf32, #tpu.memory_space<smem>>, %arg3: memref<1x32xf32, #tpu.memory_space<vmem>>, %arg4: memref<1x32xf32, #tpu.memory_space<vmem>>, %arg5: memref<32x128xf32, #tpu.memory_space<vmem>>, %arg6: memref<1x128xf32, #tpu.memory_space<vmem>>, %arg7: memref<128x32xf32, #tpu.memory_space<vmem>>, %arg8: memref<1x32xf32, #tpu.memory_space<vmem>>, %arg9: memref<16x32xf32, #tpu.memory_space<vmem>>) attributes {dimension_semantics = [#tpu.dimension_semantics<parallel>], iteration_bounds = array<i64: 1>, scalar_prefetch = 0 : i64, scratch_operands = 0 : i64, tpu.core_type = #tpu.core_type<tc>, window_params = [{transform_indices = @transform_0, window_bounds = array<i64: 16, 32>}, {transform_indices = @transform_1, window_bounds = array<i64: 1, 1>}, {pipeline_mode = #tpu.pipeline_mode<synchronous>, transform_indices = @transform_2, window_bounds = array<i64: 1, 32>}, {pipeline_mode = #tpu.pipeline_mode<synchronous>, transform_indices = @transform_3, window_bounds = array<i64: 1, 32>}, {pipeline_mode = #tpu.pipeline_mode<synchronous>, transform_indices = @transform_4, window_bounds = array<i64: 32, 128>}, {pipeline_mode = #tpu.pipeline_mode<synchronous>, transform_indices = @transform_5, window_bounds = array<i64: 1, 128>}, {pipeline_mode = #tpu.pipeline_mode<synchronous>, transform_indices = @transform_6, window_bounds = array<i64: 128, 32>}, {pipeline_mode = #tpu.pipeline_mode<synchronous>, transform_indices = @transform_7, window_bounds = array<i64: 1, 32>}, {transform_indices = @transform_8, window_bounds = array<i64: 16, 32>}]} {
    %c0 = arith.constant 0 : index
    %c0_0 = arith.constant 0 : index
    %0 = vector.load %arg1[%c0, %c0_0] : memref<16x32xf32, #tpu.memory_space<vmem>>, vector<16x32xf32>
    %cst = arith.constant dense<0.000000e+00> : vector<16xf32>
    %1 = vector.multi_reduction <add>, %0, %cst [1] : vector<16x32xf32> to vector<16xf32>
    %2 = vector.shape_cast %1 : vector<16xf32> to vector<16x1xf32>
    %cst_1 = arith.constant 3.200000e+01 : f32
    %3 = vector.broadcast %cst_1 : f32 to vector<16x1xf32>
    %4 = arith.divf %2, %3 : vector<16x1xf32>
    %5 = vector.broadcast %4 : vector<16x1xf32> to vector<16x32xf32>
    %6 = arith.subf %0, %5 : vector<16x32xf32>
    %7 = arith.mulf %6, %6 : vector<16x32xf32>
    %cst_2 = arith.constant dense<0.000000e+00> : vector<16xf32>
    %8 = vector.multi_reduction <add>, %7, %cst_2 [1] : vector<16x32xf32> to vector<16xf32>
    %9 = vector.shape_cast %8 : vector<16xf32> to vector<16x1xf32>
    %cst_3 = arith.constant 3.200000e+01 : f32
    %10 = vector.broadcast %cst_3 : f32 to vector<16x1xf32>
    %11 = arith.divf %9, %10 : vector<16x1xf32>
    %cst_4 = arith.constant 9.99999974E-6 : f32
    %12 = vector.broadcast %cst_4 : f32 to vector<16x1xf32>
    %13 = arith.addf %11, %12 : vector<16x1xf32>
    %14 = math.rsqrt %13 : vector<16x1xf32>
    %15 = vector.broadcast %14 : vector<16x1xf32> to vector<16x32xf32>
    %16 = arith.mulf %6, %15 : vector<16x32xf32>
    %c0_5 = arith.constant 0 : index
    %c0_6 = arith.constant 0 : index
    %17 = vector.load %arg3[%c0_5, %c0_6] : memref<1x32xf32, #tpu.memory_space<vmem>>, vector<1x32xf32>
    %18 = vector.broadcast %17 : vector<1x32xf32> to vector<16x32xf32>
    %19 = arith.mulf %16, %18 : vector<16x32xf32>
    %c0_7 = arith.constant 0 : index
    %c0_8 = arith.constant 0 : index
    %20 = vector.load %arg4[%c0_7, %c0_8] : memref<1x32xf32, #tpu.memory_space<vmem>>, vector<1x32xf32>
    %21 = vector.broadcast %20 : vector<1x32xf32> to vector<16x32xf32>
    %22 = arith.addf %19, %21 : vector<16x32xf32>
    %c0_9 = arith.constant 0 : index
    %c0_10 = arith.constant 0 : index
    %23 = vector.load %arg5[%c0_9, %c0_10] : memref<32x128xf32, #tpu.memory_space<vmem>>, vector<32x128xf32>
    %cst_11 = arith.constant dense<0.000000e+00> : vector<16x128xf32>
    %24 = tpu.matmul %22, %23, %cst_11 {dimension_numbers = #tpu.dot_dimension_numbers<[1], [0], [0], [1], [0, 0, 1, 1], [], []>} : vector<16x32xf32>, vector<32x128xf32>, vector<16x128xf32> -> vector<16x128xf32>
    %c0_12 = arith.constant 0 : index
    %c0_13 = arith.constant 0 : index
    %25 = vector.load %arg6[%c0_12, %c0_13] : memref<1x128xf32, #tpu.memory_space<vmem>>, vector<1x128xf32>
    %26 = vector.broadcast %25 : vector<1x128xf32> to vector<16x128xf32>
    %27 = arith.addf %24, %26 : vector<16x128xf32>
    %cst_14 = arith.constant 0.000000e+00 : f32
    %28 = vector.broadcast %cst_14 : f32 to vector<16x128xf32>
    %29 = arith.maximumf %27, %28 : vector<16x128xf32>
    %c0_15 = arith.constant 0 : index
    %c0_16 = arith.constant 0 : index
    %30 = vector.load %arg7[%c0_15, %c0_16] : memref<128x32xf32, #tpu.memory_space<vmem>>, vector<128x32xf32>
    %cst_17 = arith.constant dense<0.000000e+00> : vector<16x32xf32>
    %31 = tpu.matmul %29, %30, %cst_17 {dimension_numbers = #tpu.dot_dimension_numbers<[1], [0], [0], [1], [0, 0, 1, 1], [], []>} : vector<16x128xf32>, vector<128x32xf32>, vector<16x32xf32> -> vector<16x32xf32>
    %c0_18 = arith.constant 0 : index
    %c0_19 = arith.constant 0 : index
    %32 = vector.load %arg8[%c0_18, %c0_19] : memref<1x32xf32, #tpu.memory_space<vmem>>, vector<1x32xf32>
    %33 = vector.broadcast %32 : vector<1x32xf32> to vector<16x32xf32>
    %34 = arith.addf %31, %33 : vector<16x32xf32>
    %c0_20 = arith.constant 0 : index
    %c0_21 = arith.constant 0 : index
    %35 = memref.load %arg2[%c0_20, %c0_21] : memref<1x1xf32, #tpu.memory_space<smem>>
    %36 = vector.broadcast %35 : f32 to vector<16x32xf32>
    %37 = arith.mulf %34, %36 : vector<16x32xf32>
    %c0_22 = arith.constant 0 : index
    %c0_23 = arith.constant 0 : index
    %38 = vector.load %arg1[%c0_22, %c0_23] : memref<16x32xf32, #tpu.memory_space<vmem>>, vector<16x32xf32>
    %39 = arith.addf %37, %38 : vector<16x32xf32>
    %c0_24 = arith.constant 0 : index
    %c0_25 = arith.constant 0 : index
    %40 = vector.load %arg9[%c0_24, %c0_25] : memref<16x32xf32, #tpu.memory_space<vmem>>, vector<16x32xf32>
    tpu.vector_store %arg9[%c0_24, %c0_25], %39 {strides = array<i32>} : memref<16x32xf32, #tpu.memory_space<vmem>>, vector<16x32xf32>,
    return
  }
  func.func @transform_0(%arg0: i32) -> (i32, i32) {
    %c0_i32 = arith.constant 0 : i32
    %c0_i32_0 = arith.constant 0 : i32
    return %arg0, %c0_i32 : i32, i32
  }
  func.func @transform_1(%arg0: i32) -> (i32, i32) {
    %c0_i32 = arith.constant 0 : i32
    %c0_i32_0 = arith.constant 0 : i32
    %c0_i32_1 = arith.constant 0 : i32
    return %c0_i32, %c0_i32_0 : i32, i32
  }
  func.func @transform_2(%arg0: i32) -> (i32, i32) {
    %c0_i32 = arith.constant 0 : i32
    %c0_i32_0 = arith.constant 0 : i32
    %c0_i32_1 = arith.constant 0 : i32
    return %c0_i32, %c0_i32_0 : i32, i32
  }
  func.func @transform_3(%arg0: i32) -> (i32, i32) {
    %c0_i32 = arith.constant 0 : i32
    %c0_i32_0 = arith.constant 0 : i32
    %c0_i32_1 = arith.constant 0 : i32
    return %c0_i32, %c0_i32_0 : i32, i32
  }
  func.func @transform_4(%arg0: i32) -> (i32, i32) {
    %c0_i32 = arith.constant 0 : i32
    %c0_i32_0 = arith.constant 0 : i32
    %c0_i32_1 = arith.constant 0 : i32
    return %c0_i32, %c0_i32_0 : i32, i32
  }
  func.func @transform_5(%arg0: i32) -> (i32, i32) {
    %c0_i32 = arith.constant 0 : i32
    %c0_i32_0 = arith.constant 0 : i32
    %c0_i32_1 = arith.constant 0 : i32
    return %c0_i32, %c0_i32_0 : i32, i32
  }
  func.func @transform_6(%arg0: i32) -> (i32, i32) {
    %c0_i32 = arith.constant 0 : i32
    %c0_i32_0 = arith.constant 0 : i32
    %c0_i32_1 = arith.constant 0 : i32
    return %c0_i32, %c0_i32_0 : i32, i32
  }
  func.func @transform_7(%arg0: i32) -> (i32, i32) {
    %c0_i32 = arith.constant 0 : i32
    %c0_i32_0 = arith.constant 0 : i32
    %c0_i32_1 = arith.constant 0 : i32
    return %c0_i32, %c0_i32_0 : i32, i32
  }
  func.func @transform_8(%arg0: i32) -> (i32, i32) {
    %c0_i32 = arith.constant 0 : i32
    %c0_i32_0 = arith.constant 0 : i32
    return %arg0, %c0_i32 : i32, i32
  }
}

module attributes {stable_mosaic.version = 11 : i64} {
  func.func @adapter_kernel(%arg0: i32, %arg1: memref<16x32xf32, #tpu.memory_space<vmem>>, %arg2: memref<1x1xf32, #tpu.memory_space<smem>>, %arg3: memref<1x32xf32, #tpu.memory_space<vmem>>, %arg4: memref<1x32xf32, #tpu.memory_space<vmem>>, %arg5: memref<32x128xf32, #tpu.memory_space<vmem>>, %arg6: memref<1x128xf32, #tpu.memory_space<vmem>>, %arg7: memref<128x32xf32, #tpu.memory_space<vmem>>, %arg8: memref<1x32xf32, #tpu.memory_space<vmem>>, %arg9: memref<16x32xf32, #tpu.memory_space<vmem>>) attributes {dimension_semantics = [#tpu.dimension_semantics<parallel>], iteration_bounds = array<i64: 1>, scalar_prefetch = 0 : i64, scratch_operands = 0 : i64, tpu.core_type = #tpu.core_type<tc>, window_params = [{transform_indices = @transform_0, window_bounds = array<i64: 16, 32>}, {transform_indices = @transform_1, window_bounds = array<i64: 1, 1>}, {pipeline_mode = #tpu.pipeline_mode<synchronous>, transform_indices = @transform_2, window_bounds = array<i64: 1, 32>}, {pipeline_mode = #tpu.pipeline_mode<synchronous>, transform_indices = @transform_3, window_bounds = array<i64: 1, 32>}, {pipeline_mode = #tpu.pipeline_mode<synchronous>, transform_indices = @transform_4, window_bounds = array<i64: 32, 128>}, {pipeline_mode = #tpu.pipeline_mode<synchronous>, transform_indices = @transform_5, window_bounds = array<i64: 1, 128>}, {pipeline_mode = #tpu.pipeline_mode<synchronous>, transform_indices = @transform_6, window_bounds = array<i64: 128, 32>}, {pipeline_mode = #tpu.pipeline_mode<synchronous>, transform_indices = @transform_7, window_bounds = array<i64: 1, 32>}, {transform_indices = @transform_8, window_bounds = array<i64: 16, 32>}]} {
    %c0 = arith.constant 0 : index
    %c0_0 = arith.constant 0 : index
    %0 = vector.load %arg1[%c0, %c0_0] : memref<16x32xf32, #tpu.memory_space<vmem>>, vector<16x32xf32>
    %cst = arith.constant dense<0.000000e+00> : vector<16xf32>
    %1 = vector.multi_reduction <add>, %0, %cst [1] : vector<16x32xf32> to vector<16xf32>
    %2 = vector.shape_cast %1 : vector<16xf32> to vector<16x1xf32>
    %cst_1 = arith.constant 3.200000e+01 : f32
    %3 = vector.broadcast %cst_1 : f32 to vector<16x1xf32>
    %4 = arith.divf %2, %3 : vector<16x1xf32>
    %5 = vector.broadcast %4 : vector<16x1xf32> to vector<16x32xf32>
    %6 = arith.subf %0, %5 : vector<16x32xf32>
    %7 = arith.mulf %6, %6 : vector<16x32xf32>
    %cst_2 = arith.constant dense<0.000000e+00> : vector<16xf32>
    %8 = vector.multi_reduction <add>, %7, %cst_2 [1] : vector<16x32xf32> to vector<16xf32>
    %9 = vector.shape_cast %8 : vector<16xf32> to vector<16x1xf32>
    %cst_3 = arith.constant 3.200000e+01 : f32
    %10 = vector.broadcast %cst_3 : f32 to vector<16x1xf32>
    %11 = arith.divf %9, %10 : vector<16x1xf32>
    %cst_4 = arith.constant 9.99999974E-6 : f32
    %12 = vector.broadcast %cst_4 : f32 to vector<16x1xf32>
    %13 = arith.addf %11, %12 : vector<16x1xf32>
    %14 = math.rsqrt %13 : vector<16x1xf32>
    %15 = vector.broadcast %14 : vector<16x1xf32> to vector<16x32xf32>
    %16 = arith.mulf %6, %15 : vector<16x32xf32>
    %c0_5 = arith.constant 0 : index
    %c0_6 = arith.constant 0 : index
    %17 = vector.load %arg3[%c0_5, %c0_6] : memref<1x32xf32, #tpu.memory_space<vmem>>, vector<1x32xf32>
    %18 = vector.broadcast %17 : vector<1x32xf32> to vector<16x32xf32>
    %19 = arith.mulf %16, %18 : vector<16x32xf32>
    %c0_7 = arith.constant 0 : index
    %c0_8 = arith.constant 0 : index
    %20 = vector.load %arg4[%c0_7, %c0_8] : memref<1x32xf32, #tpu.memory_space<vmem>>, vector<1x32xf32>
    %21 = vector.broadcast %20 : vector<1x32xf32> to vector<16x32xf32>
    %22 = arith.addf %19, %21 : vector<16x32xf32>
    %c0_9 = arith.constant 0 : index
    %c0_10 = arith.constant 0 : index
    %23 = vector.load %arg5[%c0_9, %c0_10] : memref<32x128xf32, #tpu.memory_space<vmem>>, vector<32x128xf32>
    %cst_11 = arith.constant dense<0.000000e+00> : vector<16x128xf32>
    %24 = tpu.matmul %22, %23, %cst_11 {dimension_numbers = #tpu.dot_dimension_numbers<[1], [0], [0], [1], [0, 0, 1, 1], [], []>} : vector<16x32xf32>, vector<32x128xf32>, vector<16x128xf32> -> vector<16x128xf32>
    %c0_12 = arith.constant 0 : index
    %c0_13 = arith.constant 0 : index
    %25 = vector.load %arg6[%c0_12, %c0_13] : memref<1x128xf32, #tpu.memory_space<vmem>>, vector<1x128xf32>
    %26 = vector.broadcast %25 : vector<1x128xf32> to vector<16x128xf32>
    %27 = arith.addf %24, %26 : vector<16x128xf32>
    %cst_14 = arith.constant 0.000000e+00 : f32
    %28 = vector.broadcast %cst_14 : f32 to vector<16x128xf32>
    %29 = arith.maximumf %27, %28 : vector<16x128xf32>
    %c0_15 = arith.constant 0 : index
    %c0_16 = arith.constant 0 : index
    %30 = vector.load %arg7[%c0_15, %c0_16] : memref<128x32xf32, #tpu.memory_space<vmem>>, vector<128x32xf32>
    %cst_17 = arith.constant dense<0.000000e+00> : vector<16x32xf32>
    %31 = tpu.matmul %29, %30, %cst_17 {dimension_numbers = #tpu.dot_dimension_numbers<[1], [0], [0], [1], [0, 0, 1, 1], [], []>} : vector<16x128xf32>, vector<128x32xf32>, vector<16x32xf32> -> vector<16x32xf32>
    %c0_18 = arith.constant 0 : index
    %c0_19 = arith.constant 0 : index
    %32 = vector.load %arg8[%c0_18, %c0_19] : memref<1x32xf32, #tpu.memory_space<vmem>>, vector<1x32xf32>
    %33 = vector.broadcast %32 : vector<1x32xf32> to vector<16x32xf32>
    %34 = arith.addf %31, %33 : vector<16x32xf32>
    %c0_20 = arith.constant 0 : index
    %c0_21 = arith.constant 0 : index
    %35 = memref.load %arg2[%c0_20, %c0_21] : memref<1x1xf32, #tpu.memory_space<smem>>
    %36 = vector.broadcast %35 : f32 to vector<16x32xf32>
    %37 = arith.mulf %34, %36 : vector<16x32xf32>
    %c0_22 = arith.constant 0 : index
    %c0_23 = arith.constant 0 : index
    %38 = vector.load %arg1[%c0_22, %c0_23] : memref<16x32xf32, #tpu.memory_space<vmem>>, vector<16x32xf32>
    %39 = arith.addf %37, %38 : vector<16x32xf32>
    %c0_24 = arith.constant 0 : index
    %c0_25 = arith.constant 0 : index
    %40 = vector.load %arg9[%c0_24, %c0_25] : memref<16x32xf32, #tpu.memory_space<vmem>>, vector<16x32xf32>
    tpu.vector_store %arg9[%c0_24, %c0_25], %39 {strides = array<i32>} : memref<16x32xf32, #tpu.memory_space<vmem>>, vector<16x32xf32>,
    return
  }
  func.func @transform_0(%arg0: i32) -> (i32, i32) {
    %c0_i32 = arith.constant 0 : i32
    %c0_i32_0 = arith.constant 0 : i32
    return %arg0, %c0_i32 : i32, i32
  }
  func.func @transform_1(%arg0: i32) -> (i32, i32) {
    %c0_i32 = arith.constant 0 : i32
    %c0_i32_0 = arith.constant 0 : i32
    %c0_i32_1 = arith.constant 0 : i32
    return %c0_i32, %c0_i32_0 : i32, i32
  }
  func.func @transform_2(%arg0: i32) -> (i32, i32) {
    %c0_i32 = arith.constant 0 : i32
    %c0_i32_0 = arith.constant 0 : i32
    %c0_i32_1 = arith.constant 0 : i32
    return %c0_i32, %c0_i32_0 : i32, i32
  }
  func.func @transform_3(%arg0: i32) -> (i32, i32) {
    %c0_i32 = arith.constant 0 : i32
    %c0_i32_0 = arith.constant 0 : i32
    %c0_i32_1 = arith.constant 0 : i32
    return %c0_i32, %c0_i32_0 : i32, i32
  }
  func.func @transform_4(%arg0: i32) -> (i32, i32) {
    %c0_i32 = arith.constant 0 : i32
    %c0_i32_0 = arith.constant 0 : i32
    %c0_i32_1 = arith.constant 0 : i32
    return %c0_i32, %c0_i32_0 : i32, i32
  }
  func.func @transform_5(%arg0: i32) -> (i32, i32) {
    %c0_i32 = arith.constant 0 : i32
    %c0_i32_0 = arith.constant 0 : i32
    %c0_i32_1 = arith.constant 0 : i32
    return %c0_i32, %c0_i32_0 : i32, i32
  }
  func.func @transform_6(%arg0: i32) -> (i32, i32) {
    %c0_i32 = arith.constant 0 : i32
    %c0_i32_0 = arith.constant 0 : i32
    %c0_i32_1 = arith.constant 0 : i32
    return %c0_i32, %c0_i32_0 : i32, i32
  }
  func.func @transform_7(%arg0: i32) -> (i32, i32) {
    %c0_i32 = arith.constant 0 : i32
    %c0_i32_0 = arith.constant 0 : i32
    %c0_i32_1 = arith.constant 0 : i32
    return %c0_i32, %c0_i32_0 : i32, i32
  }
  func.func @transform_8(%arg0: i32) -> (i32, i32) {
    %c0_i32 = arith.constant 0 : i32
    %c0_i32_0 = arith.constant 0 : i32
    return %arg0, %c0_i32 : i32, i32
  }
}

</mosaic_0001>

<bundles_post_ra>
// kernel: tpu_custom_call.1
= control target key start
LH: loop header
LB: loop body
LE: loop exit
PB: predicated region body
PF: predicated region fallthrough
CT: control target
= control target key end

     0   :  { %vm33_vm0 = vcmask 261120   ;;  %s424_s0 = inlined_call_operand.vmem [shape: f32[16,32], index: 0, kind: input, shape index: {}]   ;;  %s425_s1 = inlined_call_operand.<no memory space> [shape: f32[1,1], index: 1, kind: input, shape index: {}]   ;;  %s426_s2 = inlined_call_operand.vmem [shape: f32[1,32], index: 2, kind: input, shape index: {}]   ;;  %s427_s3 = inlined_call_operand.vmem [shape: f32[1,32], index: 3, kind: input, shape index: {}]   ;;  %s428_s4 = inlined_call_operand.vmem [shape: f32[32,128], index: 4, kind: input, shape index: {}]   ;;  %s429_s5 = inlined_call_operand.vmem [shape: f32[1,128], index: 5, kind: input, shape index: {}]   ;;  %s430_s6 = inlined_call_operand.vmem [shape: f32[128,32], index: 6, kind: input, shape index: {}]   ;;  %s431_s7 = inlined_call_operand.vmem [shape: f32[1,32], index: 7, kind: input, shape index: {}]   ;;  %s432_s8 = inlined_call_operand.hbm [shape: f32[16,32], index: 8, kind: output, shape index: {}]  }
   0x1   :  { %v315_v0 = vld [vmem:[%s424_s0] sm:$0xff] }
   0x2   :  { %v34_v1 = vsel %vm33_vm0, %v315_v0, 0.0 }
   0x3   :  { %35 = vadd.xlane.f32.xlu0 %v34_v1 }
   0x4   :  { %14 = vsyncpa [#allocation4], 0  ;;  %v322_v2 = vld [vmem:[%s424_s0 + $0x8] sm:$0xff]  ;;  %v263_v4 = vmov 32.0   ;;  %v100_v21 = vld [vmem:[%s428_s4 + $0x18] sm:$0xff]  ;;  %s193_s10 = sshll.u32 %s432_s8, 4  ;;  %s194_s10 = int_to_ptr.hbm [resolvable:$true] %s193_s10 }
   0x5   :  { %v37_v3 = vsel %vm33_vm0, %v322_v2, 0.0  ;;  %231 = vrcp.f32 %v263_v4  ;;  %123 = vmatpush.msra.mxu0 %v100_v21  ;;  %v99_v22 = vld [vmem:[%s428_s4 + $0x10] sm:$0xff]  ;;  %v98_v23 = vld [vmem:[%s428_s4 + $0x8] sm:$0xff]  ;;  %v97_v24 = vld [vmem:[%s428_s4] sm:$0xff] }
   0x6   :  { %v151_v28 = vld [vmem:[%s430_s6 + $0x78] sm:$0xff]  ;;  %v150_v29 = vld [vmem:[%s430_s6 + $0x70] sm:$0xff]  ;;  %v149_v30 = vld [vmem:[%s430_s6 + $0x68] sm:$0xff] }
   0x7   :  { %124 = vmatpush.msra.mxu0 %v99_v22  ;;  %156 = vmatpush.msra.mxu1 %v151_v28  ;;  %v148_v33 = vld [vmem:[%s430_s6 + $0x60] sm:$0xff]  ;;  %v147_v36 = vld [vmem:[%s430_s6 + $0x58] sm:$0xff]  ;;  %v146_v38 = vld [vmem:[%s430_s6 + $0x50] sm:$0xff] }
   0x8   :  { %207 = vmatpush.msra.mxu2 %v151_v28  ;;  %v145_v40 = vld [vmem:[%s430_s6 + $0x48] sm:$0xff]  ;;  %v144_v42 = vld [vmem:[%s430_s6 + $0x40] sm:$0xff]  ;;  %v143_v45 = vld [vmem:[%s430_s6 + $0x38] sm:$0xff] }
   0x9   :  { %125 = vmatpush.msra.mxu0 %v98_v23  ;;  %157 = vmatpush.msra.mxu1 %v150_v29  ;;  %v227_v48 = vld [vmem:[%s426_s2] ss:$0 sm:$0xff]  ;;  %v142_v49 = vld [vmem:[%s430_s6 + $0x30] sm:$0xff]  ;;  %v141_v54 = vld [vmem:[%s430_s6 + $0x28] sm:$0xff] }
   0xa   :  { %208 = vmatpush.msra.mxu2 %v150_v29  ;;  %v228_v53 = vld [vmem:[%s427_s3] ss:$0 sm:$0xff]  ;;  %v139_v60 = vld [vmem:[%s430_s6 + $0x18] sm:$0xff]  ;;  %v138_v4 = vld [vmem:[%s430_s6 + $0x10] sm:$0xff] }
   0xb   :  { %38 = vadd.xlane.f32.xlu0 %v37_v3  ;;  %v232_v5 = vpop.eup %231  ;;  %126 = vmatpush.msra.mxu0 %v97_v24  ;;  %v140_v57 = vld [vmem:[%s430_s6 + $0x20] sm:$0xff] }
   0xc   :  { %v41_v6 = vmul.f32 32.0, %v232_v5  ;;  %vm45_vm1 = vweird.f32 %v232_v5  ;;  %158 = vmatpush.msra.mxu1 %v149_v30  ;;  %209 = vmatpush.msra.mxu2 %v149_v30 }
   0xe   :  { %v42_v7 = vsub.f32 1.0, %v41_v6  ;;  %159 = vmatpush.msra.mxu1 %v148_v33  ;;  %210 = vmatpush.msra.mxu2 %v148_v33  ;;  %v136_v6 = vld [vmem:[%s430_s6] sm:$0xff] }
  0x10   :  { %v43_v8 = vmul.f32 %v232_v5, %v42_v7  ;;  %160 = vmatpush.msra.mxu1 %v147_v36  ;;  %211 = vmatpush.msra.mxu2 %v147_v36  ;;  %v229_v7 = vld [vmem:[%s429_s5] ss:$0 sm:$0xff]  ;;  %s264_s5 = smov [#allocation3]  }
  0x11   :  { %s191_s30 = sshll.u32 %s264_s5, 4  ;;  %s192_s30 = int_to_ptr.vmem [resolvable:$true] %s191_s30 }
  0x12   :  { %v44_v9 = vadd.f32 %v232_v5, %v43_v8  ;;  %161 = vmatpush.msra.mxu1 %v146_v38  ;;  %212 = vmatpush.msra.mxu2 %v146_v38 }
  0x14   :  { %v46_v10 = vsel %vm45_vm1, %v232_v5, %v44_v9  ;;  %162 = vmatpush.msra.mxu1 %v145_v40  ;;  %213 = vmatpush.msra.mxu2 %v145_v40  ;;  %v137_v5 = vld [vmem:[%s430_s6 + $0x8] sm:$0xff] }
  0x16   :  { %163 = vmatpush.msra.mxu1 %v144_v42  ;;  %214 = vmatpush.msra.mxu2 %v144_v42 }
  0x18   :  { %164 = vmatpush.msra.mxu1 %v143_v45  ;;  %215 = vmatpush.msra.mxu2 %v143_v45 }
  0x1a   :  { %165 = vmatpush.msra.mxu1 %v142_v49  ;;  %216 = vmatpush.msra.mxu2 %v142_v49 }
  0x1c   :  { %166 = vmatpush.msra.mxu1 %v141_v54  ;;  %217 = vmatpush.msra.mxu2 %v141_v54 }
  0x1e   :  { %167 = vmatpush.msra.mxu1 %v140_v57  ;;  %218 = vmatpush.msra.mxu2 %v140_v57 }
  0x20   :  { %168 = vmatpush.msra.mxu1 %v139_v60  ;;  %219 = vmatpush.msra.mxu2 %v139_v60 }
  0x22   :  { %169 = vmatpush.msra.mxu1 %v138_v4  ;;  %220 = vmatpush.msra.mxu2 %v138_v4 }
  0x24   :  { %170 = vmatpush.msra.mxu1 %v137_v5  ;;  %221 = vmatpush.msra.mxu2 %v137_v5 }
  0x26   :  { %171 = vmatpush.msra.mxu1 %v136_v6  ;;  %222 = vmatpush.msra.mxu2 %v136_v6 }
  0x76   :  { %v36_v11 = vpop.xlane.xlu0 %35 }
  0x77   :  { %v47_v12 = vmul.f32 %v46_v10, %v36_v11 }
  0x79   :  { %v327_v13 = vsub.f32 %v315_v0, %v47_v12 }
  0x7b   :  { %v51_v14 = vmul.f32 %v327_v13, %v327_v13 }
  0x7d   :  { %v53_v15 = vsel %vm33_vm0, %v51_v14, 0.0  ;;  %v230_v14 = vld [vmem:[%s431_s7] ss:$0 sm:$0xff]  ;;  %s266_s7 = smov 8  }
  0x7e   :  { %54 = vadd.xlane.f32.xlu1 %v53_v15  ;;  %v39_v16 = vpop.xlane.xlu0 %38 }
  0x7f   :  { %v48_v17 = vmul.f32 %v46_v10, %v39_v16  ;;  %v180_v16 = vstv %s425_s1  ;;  %s265_s1 = smov 128  }
  0x81   :  { %v333_v18 = vsub.f32 %v322_v2, %v48_v17 }
  0x83   :  { %v52_v19 = vmul.f32 %v333_v18, %v333_v18 }
  0x85   :  { %v56_v20 = vsel %vm33_vm0, %v52_v19, 0.0 }
  0x86   :  { %57 = vadd.xlane.f32.xlu1 %v56_v20 }
  0xf1   :  { %v55_v25 = vpop.xlane.xlu1 %54 }
  0xf2   :  { %v59_v26 = vmul.f32 %v55_v25, %v46_v10 }
  0xf4   :  { %v61_v27 = vadd.f32 1e-05, %v59_v26 }
  0xf6   :  { %233 = vrsqrt.f32 %v61_v27  ;;  %vm69_vm3 = vweird.f32 %v61_v27 }
  0xf9   :  { %v58_v31 = vpop.xlane.xlu1 %57 }
  0xfa   :  { %v60_v32 = vmul.f32 %v58_v31, %v46_v10 }
  0xfc   :  { %v234_v34 = vpop.eup %233  ;;  %v62_v35 = vadd.f32 1e-05, %v60_v32 }
  0xfd   :  { %v64_v37 = vmul.f32 %v234_v34, %v61_v27  ;;  %vm70_vm2 = vweird.f32 %v234_v34 }
  0xfe   :  { %235 = vrsqrt.f32 %v62_v35  ;;  %vm71_vm4 = vmor %vm69_vm3, %vm70_vm2  ;;  %vm79_vm6 = vweird.f32 %v62_v35 }
  0xff   :  { %v65_v39 = vmul.f32 %v234_v34, %v64_v37 }
 0x101   :  { %v66_v41 = vmul.f32 0.5, %v65_v39 }
 0x103   :  { %v67_v43 = vsub.f32 1.5, %v66_v41 }
 0x104   :  { %v236_v44 = vpop.eup %235 }
 0x105   :  { %v68_v46 = vmul.f32 %v234_v34, %v67_v43  ;;  %v74_v47 = vmul.f32 %v236_v44, %v62_v35  ;;  %vm80_vm5 = vweird.f32 %v236_v44 }
 0x106   :  { %vm81_vm7 = vmor %vm79_vm6, %vm80_vm5 }
 0x107   :  { %v72_v50 = vsel %vm71_vm4, %v234_v34, %v68_v46  ;;  %v75_v51 = vmul.f32 %v236_v44, %v74_v47 }
 0x108   :  { %v83_v52 = vmul.f32 %v72_v50, %v327_v13 }
 0x109   :  { %v76_v55 = vmul.f32 0.5, %v75_v51 }
 0x10a   :  { %v89_v56 = vmul.f32 %v227_v48, %v83_v52 }
 0x10b   :  { %v77_v58 = vsub.f32 1.5, %v76_v55 }
 0x10c   :  { %v95_v59 = vadd.f32 %v228_v53, %v89_v56 }
 0x10d   :  { %v78_v61 = vmul.f32 %v236_v44, %v77_v58 }
 0x10e   :  { %205 = vmatmul.msk.f32.vlgmr.msra.gmra.mxu0 %vm33_vm0, %v95_v59 }
 0x10f   :  { %v82_v62 = vsel %vm81_vm7, %v236_v44, %v78_v61 }
 0x110   :  { %v84_v63 = vmul.f32 %v82_v62, %v333_v18 }
 0x112   :  { %v90_v1 = vmul.f32 %v227_v48, %v84_v63 }
 0x114   :  { %v96_v3 = vadd.f32 %v228_v53, %v90_v1 }
 0x116   :  { %206 = vmatmul.msk.f32.gmra.mxu0 %vm33_vm0, %v96_v3 }
 0x18b   :  { %v128_v8 = vpop.f32.mrf.mxu0 }
 0x18c   :  { %v129_v9 = vadd.f32 %v229_v7, %v128_v8 }
 0x18e   :  { %v134_v10 = vmax.f32 %v129_v9, 0.0 }
 0x190   :  { %172 = vmatmul.f32.vlgmr.msra.gmra.mxu1 %v134_v10 }
 0x193   :  { %v131_v11 = vpop.f32.mrf.mxu0 }
 0x194   :  { %v132_v12 = vadd.f32 %v229_v7, %v131_v11 }
 0x196   :  { %v135_v13 = vmax.f32 %v132_v12, 0.0 }
 0x198   :  { %175 = vmatmul.f32.vlgmr.msra.gmra.mxu2 %v135_v13 }
 0x20d   :  { %v173_v15 = vpop.f32.mrf.mxu1 }
 0x20e   :  { %v174_v17 = vadd.f32 %v230_v14, %v173_v15 }
 0x210   :  { %v181_v18 = vmul.f32 %v180_v16, %v174_v17 }
 0x212   :  { %v183_v19 = vadd.f32 %v181_v18, %v315_v0 }
 0x214   :  { %185 = vst.msk [vmem:[#allocation3] sm:$0xff] %vm33_vm0, %v183_v19 }
 0x21b   :  { %v176_v20 = vpop.f32.mrf.mxu2 }
 0x21c   :  { %v177_v21 = vadd.f32 %v230_v14, %v176_v20 }
 0x21e   :  { %v182_v22 = vmul.f32 %v180_v16, %v177_v21 }
 0x220   :  { %v184_v23 = vadd.f32 %v182_v22, %v322_v2 }
 0x222   :  { %186 = vst.msk [vmem:[#allocation3 + $0x8] sm:$0xff] %vm33_vm0, %v184_v23 }
 0x223   :  { %199 = dma.vmem_to_hbm [thread:$0]  %s192_s30, 256, %s194_s10, [#allocation4], %s265_s1, %s265_s1, %s266_s7  }
 0x224   :  { %261 = dma.done.wait [#allocation4], 256  }
 0x225   :  { %262 = vsyncadd [#allocation4], 4294967040 }
 0x226   :  { %204 = vsyncpa [#allocation4], 1 }

// kernel: tpu_custom_call.1
= control target key start
LH: loop header
LB: loop body
LE: loop exit
PB: predicated region body
PF: predicated region fallthrough
CT: control target
= control target key end

     0   :  { %vm33_vm0 = vcmask 261120   ;;  %s424_s0 = inlined_call_operand.vmem [shape: f32[16,32], index: 0, kind: input, shape index: {}]   ;;  %s425_s1 = inlined_call_operand.<no memory space> [shape: f32[1,1], index: 1, kind: input, shape index: {}]   ;;  %s426_s2 = inlined_call_operand.vmem [shape: f32[1,32], index: 2, kind: input, shape index: {}]   ;;  %s427_s3 = inlined_call_operand.vmem [shape: f32[1,32], index: 3, kind: input, shape index: {}]   ;;  %s428_s4 = inlined_call_operand.vmem [shape: f32[32,128], index: 4, kind: input, shape index: {}]   ;;  %s429_s5 = inlined_call_operand.vmem [shape: f32[1,128], index: 5, kind: input, shape index: {}]   ;;  %s430_s6 = inlined_call_operand.vmem [shape: f32[128,32], index: 6, kind: input, shape index: {}]   ;;  %s431_s7 = inlined_call_operand.vmem [shape: f32[1,32], index: 7, kind: input, shape index: {}]   ;;  %s432_s8 = inlined_call_operand.hbm [shape: f32[16,32], index: 8, kind: output, shape index: {}]  }
   0x1   :  { %v315_v0 = vld [vmem:[%s424_s0] sm:$0xff] }
   0x2   :  { %v34_v1 = vsel %vm33_vm0, %v315_v0, 0.0 }
   0x3   :  { %35 = vadd.xlane.f32.xlu0 %v34_v1 }
   0x4   :  { %14 = vsyncpa [#allocation4], 0  ;;  %v322_v2 = vld [vmem:[%s424_s0 + $0x8] sm:$0xff]  ;;  %v263_v4 = vmov 32.0   ;;  %v100_v21 = vld [vmem:[%s428_s4 + $0x18] sm:$0xff]  ;;  %s193_s10 = sshll.u32 %s432_s8, 4  ;;  %s194_s10 = int_to_ptr.hbm [resolvable:$true] %s193_s10 }
   0x5   :  { %v37_v3 = vsel %vm33_vm0, %v322_v2, 0.0  ;;  %231 = vrcp.f32 %v263_v4  ;;  %123 = vmatpush.msra.mxu0 %v100_v21  ;;  %v99_v22 = vld [vmem:[%s428_s4 + $0x10] sm:$0xff]  ;;  %v98_v23 = vld [vmem:[%s428_s4 + $0x8] sm:$0xff]  ;;  %v97_v24 = vld [vmem:[%s428_s4] sm:$0xff] }
   0x6   :  { %v151_v28 = vld [vmem:[%s430_s6 + $0x78] sm:$0xff]  ;;  %v150_v29 = vld [vmem:[%s430_s6 + $0x70] sm:$0xff]  ;;  %v149_v30 = vld [vmem:[%s430_s6 + $0x68] sm:$0xff] }
   0x7   :  { %124 = vmatpush.msra.mxu0 %v99_v22  ;;  %156 = vmatpush.msra.mxu1 %v151_v28  ;;  %v148_v33 = vld [vmem:[%s430_s6 + $0x60] sm:$0xff]  ;;  %v147_v36 = vld [vmem:[%s430_s6 + $0x58] sm:$0xff]  ;;  %v146_v38 = vld [vmem:[%s430_s6 + $0x50] sm:$0xff] }
   0x8   :  { %207 = vmatpush.msra.mxu2 %v151_v28  ;;  %v145_v40 = vld [vmem:[%s430_s6 + $0x48] sm:$0xff]  ;;  %v144_v42 = vld [vmem:[%s430_s6 + $0x40] sm:$0xff]  ;;  %v143_v45 = vld [vmem:[%s430_s6 + $0x38] sm:$0xff] }
   0x9   :  { %125 = vmatpush.msra.mxu0 %v98_v23  ;;  %157 = vmatpush.msra.mxu1 %v150_v29  ;;  %v227_v48 = vld [vmem:[%s426_s2] ss:$0 sm:$0xff]  ;;  %v142_v49 = vld [vmem:[%s430_s6 + $0x30] sm:$0xff]  ;;  %v141_v54 = vld [vmem:[%s430_s6 + $0x28] sm:$0xff] }
   0xa   :  { %208 = vmatpush.msra.mxu2 %v150_v29  ;;  %v228_v53 = vld [vmem:[%s427_s3] ss:$0 sm:$0xff]  ;;  %v139_v60 = vld [vmem:[%s430_s6 + $0x18] sm:$0xff]  ;;  %v138_v4 = vld [vmem:[%s430_s6 + $0x10] sm:$0xff] }
   0xb   :  { %38 = vadd.xlane.f32.xlu0 %v37_v3  ;;  %v232_v5 = vpop.eup %231  ;;  %126 = vmatpush.msra.mxu0 %v97_v24  ;;  %v140_v57 = vld [vmem:[%s430_s6 + $0x20] sm:$0xff] }
   0xc   :  { %v41_v6 = vmul.f32 32.0, %v232_v5  ;;  %vm45_vm1 = vweird.f32 %v232_v5  ;;  %158 = vmatpush.msra.mxu1 %v149_v30  ;;  %209 = vmatpush.msra.mxu2 %v149_v30 }
   0xe   :  { %v42_v7 = vsub.f32 1.0, %v41_v6  ;;  %159 = vmatpush.msra.mxu1 %v148_v33  ;;  %210 = vmatpush.msra.mxu2 %v148_v33  ;;  %v136_v6 = vld [vmem:[%s430_s6] sm:$0xff] }
  0x10   :  { %v43_v8 = vmul.f32 %v232_v5, %v42_v7  ;;  %160 = vmatpush.msra.mxu1 %v147_v36  ;;  %211 = vmatpush.msra.mxu2 %v147_v36  ;;  %v229_v7 = vld [vmem:[%s429_s5] ss:$0 sm:$0xff]  ;;  %s264_s5 = smov [#allocation3]  }
  0x11   :  { %s191_s30 = sshll.u32 %s264_s5, 4  ;;  %s192_s30 = int_to_ptr.vmem [resolvable:$true] %s191_s30 }
  0x12   :  { %v44_v9 = vadd.f32 %v232_v5, %v43_v8  ;;  %161 = vmatpush.msra.mxu1 %v146_v38  ;;  %212 = vmatpush.msra.mxu2 %v146_v38 }
  0x14   :  { %v46_v10 = vsel %vm45_vm1, %v232_v5, %v44_v9  ;;  %162 = vmatpush.msra.mxu1 %v145_v40  ;;  %213 = vmatpush.msra.mxu2 %v145_v40  ;;  %v137_v5 = vld [vmem:[%s430_s6 + $0x8] sm:$0xff] }
  0x16   :  { %163 = vmatpush.msra.mxu1 %v144_v42  ;;  %214 = vmatpush.msra.mxu2 %v144_v42 }
  0x18   :  { %164 = vmatpush.msra.mxu1 %v143_v45  ;;  %215 = vmatpush.msra.mxu2 %v143_v45 }
  0x1a   :  { %165 = vmatpush.msra.mxu1 %v142_v49  ;;  %216 = vmatpush.msra.mxu2 %v142_v49 }
  0x1c   :  { %166 = vmatpush.msra.mxu1 %v141_v54  ;;  %217 = vmatpush.msra.mxu2 %v141_v54 }
  0x1e   :  { %167 = vmatpush.msra.mxu1 %v140_v57  ;;  %218 = vmatpush.msra.mxu2 %v140_v57 }
  0x20   :  { %168 = vmatpush.msra.mxu1 %v139_v60  ;;  %219 = vmatpush.msra.mxu2 %v139_v60 }
  0x22   :  { %169 = vmatpush.msra.mxu1 %v138_v4  ;;  %220 = vmatpush.msra.mxu2 %v138_v4 }
  0x24   :  { %170 = vmatpush.msra.mxu1 %v137_v5  ;;  %221 = vmatpush.msra.mxu2 %v137_v5 }
  0x26   :  { %171 = vmatpush.msra.mxu1 %v136_v6  ;;  %222 = vmatpush.msra.mxu2 %v136_v6 }
  0x76   :  { %v36_v11 = vpop.xlane.xlu0 %35 }
  0x77   :  { %v47_v12 = vmul.f32 %v46_v10, %v36_v11 }
  0x79   :  { %v327_v13 = vsub.f32 %v315_v0, %v47_v12 }
  0x7b   :  { %v51_v14 = vmul.f32 %v327_v13, %v327_v13 }
  0x7d   :  { %v53_v15 = vsel %vm33_vm0, %v51_v14, 0.0  ;;  %v230_v14 = vld [vmem:[%s431_s7] ss:$0 sm:$0xff]  ;;  %s266_s7 = smov 8  }
  0x7e   :  { %54 = vadd.xlane.f32.xlu1 %v53_v15  ;;  %v39_v16 = vpop.xlane.xlu0 %38 }
  0x7f   :  { %v48_v17 = vmul.f32 %v46_v10, %v39_v16  ;;  %v180_v16 = vstv %s425_s1  ;;  %s265_s1 = smov 128  }
  0x81   :  { %v333_v18 = vsub.f32 %v322_v2, %v48_v17 }
  0x83   :  { %v52_v19 = vmul.f32 %v333_v18, %v333_v18 }
  0x85   :  { %v56_v20 = vsel %vm33_vm0, %v52_v19, 0.0 }
  0x86   :  { %57 = vadd.xlane.f32.xlu1 %v56_v20 }
  0xf1   :  { %v55_v25 = vpop.xlane.xlu1 %54 }
  0xf2   :  { %v59_v26 = vmul.f32 %v55_v25, %v46_v10 }
  0xf4   :  { %v61_v27 = vadd.f32 1e-05, %v59_v26 }
  0xf6   :  { %233 = vrsqrt.f32 %v61_v27  ;;  %vm69_vm3 = vweird.f32 %v61_v27 }
  0xf9   :  { %v58_v31 = vpop.xlane.xlu1 %57 }
  0xfa   :  { %v60_v32 = vmul.f32 %v58_v31, %v46_v10 }
  0xfc   :  { %v234_v34 = vpop.eup %233  ;;  %v62_v35 = vadd.f32 1e-05, %v60_v32 }
  0xfd   :  { %v64_v37 = vmul.f32 %v234_v34, %v61_v27  ;;  %vm70_vm2 = vweird.f32 %v234_v34 }
  0xfe   :  { %235 = vrsqrt.f32 %v62_v35  ;;  %vm71_vm4 = vmor %vm69_vm3, %vm70_vm2  ;;  %vm79_vm6 = vweird.f32 %v62_v35 }
  0xff   :  { %v65_v39 = vmul.f32 %v234_v34, %v64_v37 }
 0x101   :  { %v66_v41 = vmul.f32 0.5, %v65_v39 }
 0x103   :  { %v67_v43 = vsub.f32 1.5, %v66_v41 }
 0x104   :  { %v236_v44 = vpop.eup %235 }
 0x105   :  { %v68_v46 = vmul.f32 %v234_v34, %v67_v43  ;;  %v74_v47 = vmul.f32 %v236_v44, %v62_v35  ;;  %vm80_vm5 = vweird.f32 %v236_v44 }
 0x106   :  { %vm81_vm7 = vmor %vm79_vm6, %vm80_vm5 }
 0x107   :  { %v72_v50 = vsel %vm71_vm4, %v234_v34, %v68_v46  ;;  %v75_v51 = vmul.f32 %v236_v44, %v74_v47 }
 0x108   :  { %v83_v52 = vmul.f32 %v72_v50, %v327_v13 }
 0x109   :  { %v76_v55 = vmul.f32 0.5, %v75_v51 }
 0x10a   :  { %v89_v56 = vmul.f32 %v227_v48, %v83_v52 }
 0x10b   :  { %v77_v58 = vsub.f32 1.5, %v76_v55 }
 0x10c   :  { %v95_v59 = vadd.f32 %v228_v53, %v89_v56 }
 0x10d   :  { %v78_v61 = vmul.f32 %v236_v44, %v77_v58 }
 0x10e   :  { %205 = vmatmul.msk.f32.vlgmr.msra.gmra.mxu0 %vm33_vm0, %v95_v59 }
 0x10f   :  { %v82_v62 = vsel %vm81_vm7, %v236_v44, %v78_v61 }
 0x110   :  { %v84_v63 = vmul.f32 %v82_v62, %v333_v18 }
 0x112   :  { %v90_v1 = vmul.f32 %v227_v48, %v84_v63 }
 0x114   :  { %v96_v3 = vadd.f32 %v228_v53, %v90_v1 }
 0x116   :  { %206 = vmatmul.msk.f32.gmra.mxu0 %vm33_vm0, %v96_v3 }
 0x18b   :  { %v128_v8 = vpop.f32.mrf.mxu0 }
 0x18c   :  { %v129_v9 = vadd.f32 %v229_v7, %v128_v8 }
 0x18e   :  { %v134_v10 = vmax.f32 %v129_v9, 0.0 }
 0x190   :  { %172 = vmatmul.f32.vlgmr.msra.gmra.mxu1 %v134_v10 }
 0x193   :  { %v131_v11 = vpop.f32.mrf.mxu0 }
 0x194   :  { %v132_v12 = vadd.f32 %v229_v7, %v131_v11 }
 0x196   :  { %v135_v13 = vmax.f32 %v132_v12, 0.0 }
 0x198   :  { %175 = vmatmul.f32.vlgmr.msra.gmra.mxu2 %v135_v13 }
 0x20d   :  { %v173_v15 = vpop.f32.mrf.mxu1 }
 0x20e   :  { %v174_v17 = vadd.f32 %v230_v14, %v173_v15 }
 0x210   :  { %v181_v18 = vmul.f32 %v180_v16, %v174_v17 }
 0x212   :  { %v183_v19 = vadd.f32 %v181_v18, %v315_v0 }
 0x214   :  { %185 = vst.msk [vmem:[#allocation3] sm:$0xff] %vm33_vm0, %v183_v19 }
 0x21b   :  { %v176_v20 = vpop.f32.mrf.mxu2 }
 0x21c   :  { %v177_v21 = vadd.f32 %v230_v14, %v176_v20 }
 0x21e   :  { %v182_v22 = vmul.f32 %v180_v16, %v177_v21 }
 0x220   :  { %v184_v23 = vadd.f32 %v182_v22, %v322_v2 }
 0x222   :  { %186 = vst.msk [vmem:[#allocation3 + $0x8] sm:$0xff] %vm33_vm0, %v184_v23 }
 0x223   :  { %199 = dma.vmem_to_hbm [thread:$0]  %s192_s30, 256, %s194_s10, [#allocation4], %s265_s1, %s265_s1, %s266_s7  }
 0x224   :  { %261 = dma.done.wait [#allocation4], 256  }
 0x225   :  { %262 = vsyncadd [#allocation4], 4294967040 }
 0x226   :  { %204 = vsyncpa [#allocation4], 1 }

</bundles_post_ra>
